<compile_context>
chip_gen: v6e
topology: v6e:2x2x1
jax: 0.10.0
libtpu: 0.0.40
codegen_flags: <defaults>
</compile_context>

<pallas_src>
import jax
import jax.numpy as jnp
from jax.experimental import pallas as pl
from jax.experimental.pallas import tpu as pltpu


def _net_kernel(w_ref, x_ref, o_ref):
    # w_ref: (11,) f32 in SMEM:
    #   [w1a0, w1a1, w1a2, b1a, w1b0, w1b1, w1b2, b1b, w2_0, w2_1, b2]
    # x_ref: (6, TR, 128) f32 in VMEM  (feature, batch-sublane-row, batch-lane)
    # o_ref: (TR, 128)    f32 in VMEM
    a0 = x_ref[0]
    a1 = x_ref[1]
    a2 = x_ref[2]
    b0 = x_ref[3]
    b1 = x_ref[4]
    b2 = x_ref[5]

    # branch a: Linear(3,1) + ReLU  (scalar-weighted FMAs on dense (8,128) vregs)
    x1 = jnp.maximum(w_ref[0] * a0 + w_ref[1] * a1 + w_ref[2] * a2 + w_ref[3], 0.0)
    # branch b: Linear(3,1) + ReLU
    x2 = jnp.maximum(w_ref[4] * b0 + w_ref[5] * b1 + w_ref[6] * b2 + w_ref[7], 0.0)
    # fc21([x1, x2]) + sigmoid  (w2 applied AFTER the ReLUs -- not foldable)
    y = jax.nn.sigmoid(w_ref[8] * x1 + w_ref[9] * x2 + w_ref[10])

    o_ref[...] = y.astype(o_ref.dtype)


def _pick_tile_rows(rows: int) -> int:
    """Rows (of 128 batch lanes) per grid step; always a multiple of 8."""
    def round8_up(n):
        return max(8, ((n + 7) // 8) * 8)

    if rows <= 32:                       # small batch -> a single tile
        return round8_up(rows)
    # Large batch: target ~1024 rows (~3 MiB input block, ~7 MiB total
    # double-buffered -> safe under every generation's scoped-VMEM default),
    # but keep >= 4 grid steps so v7x's two TensorCores both get work.
    tr = min(1024, rows // 4)
    return max(8, (tr // 8) * 8)


@jax.jit
def net_forward(x, params):
    """x: (B, 6) float; params: dict of weights/biases. Returns (B, 1) f32."""
    B = x.shape[0]
    rows = pl.cdiv(B, 128)
    tr = _pick_tile_rows(rows)
    rows_pad = pl.cdiv(rows, tr) * tr
    B_pad = rows_pad * 128

    # Layout plumbing only (candidate for fusion into the pallas_call input):
    # (B, 6) -> pad -> transpose -> (6, rows_pad, 128): batch on sublane+lane.
    xp = jnp.pad(x.astype(jnp.float32), ((0, B_pad - B), (0, 0)))
    x3 = xp.T.reshape(6, rows_pad, 128)

    # Pack the 11 weight/bias scalars; they stay resident in SMEM.
    w_packed = jnp.concatenate([
        params["w1a"].reshape(-1), params["b1a"].reshape(-1),
        params["w1b"].reshape(-1), params["b1b"].reshape(-1),
        params["w2"].reshape(-1),  params["b2"].reshape(-1),
    ]).astype(jnp.float32)                                        # (11,)

    out = pl.pallas_call(
        _net_kernel,
        out_shape=jax.ShapeDtypeStruct((rows_pad, 128), jnp.float32),
        grid=(rows_pad // tr,),
        in_specs=[
            pl.BlockSpec(memory_space=pltpu.MemorySpace.SMEM),    # packed weights
            pl.BlockSpec((6, tr, 128), lambda i: (0, i, 0)),      # x tile
        ],
        out_specs=pl.BlockSpec((tr, 128), lambda i: (i, 0)),
        compiler_params=pltpu.CompilerParams(
            dimension_semantics=("parallel",),
            allow_input_fusion=[False, True],
        ),
        cost_estimate=pl.CostEstimate(
            flops=20 * B_pad,
            transcendentals=B_pad,
            bytes_accessed=28 * B_pad,
        ),
    )(w_packed, x3)

    return out.reshape(B_pad)[:B][:, None]                        # (B, 1)


def init_params(key):
    """Deterministic init mirroring nn.Linear (uniform +/- 1/sqrt(fan_in))."""
    k = jax.random.split(key, 6)

    def lin(kw, kb, fan_in, fan_out):
        bound = 1.0 / jnp.sqrt(fan_in)
        w = jax.random.uniform(kw, (fan_in, fan_out), jnp.float32, -bound, bound)
        b = jax.random.uniform(kb, (1, fan_out), jnp.float32, -bound, bound)
        return w, b

    w1a, b1a = lin(k[0], k[1], 3, 1)
    w1b, b1b = lin(k[2], k[3], 3, 1)
    w2, b2 = lin(k[4], k[5], 2, 1)
    return {"w1a": w1a, "b1a": b1a,
            "w1b": w1b, "b1b": b1b,
            "w2": w2, "b2": b2}


def net_forward_ref(x, p):
    x1 = jax.nn.relu(x[:, :3] @ p["w1a"] + p["b1a"])
    x2 = jax.nn.relu(x[:, 3:] @ p["w1b"] + p["b1b"])
    h = jnp.concatenate([x1, x2], axis=1)
    return jax.nn.sigmoid(h @ p["w2"] + p["b2"])


if __name__ == "__main__":
    key = jax.random.PRNGKey(0)
    kx, kx2, kx3, kp = jax.random.split(key, 4)

    params = init_params(kp)

    # Small case: the module's example row plus one random row (B=2).
    row0 = jnp.array([[1.0, 2.0, 3.0, 45.0, 67.0, 45.0]], dtype=jnp.float32)
    row1 = jax.random.normal(kx, (1, 6), jnp.float32)
    x_small = jnp.concatenate([row0, row1], axis=0)               # (2, 6)

    out_small = jax.block_until_ready(net_forward(x_small, params))
    ref_small = net_forward_ref(x_small, params)
    assert out_small.shape == (2, 1)
    assert jnp.allclose(out_small, ref_small, atol=1e-5, rtol=1e-5), (
        out_small, ref_small)

    # Padding path (B not a multiple of 128).
    x_mid = jax.random.normal(kx2, (300, 6), jnp.float32) * 3.0
    out_mid = jax.block_until_ready(net_forward(x_mid, params))
    ref_mid = net_forward_ref(x_mid, params)
    assert out_mid.shape == (300, 1)
    assert jnp.allclose(out_mid, ref_mid, atol=1e-5, rtol=1e-5)

    # Multi-tile grid path (grid > 1, exercises the "parallel" batch axis).
    x_big = jax.random.normal(kx3, (5000, 6), jnp.float32) * 2.0
    out_big = jax.block_until_ready(net_forward(x_big, params))
    ref_big = net_forward_ref(x_big, params)
    assert out_big.shape == (5000, 1)
    assert jnp.allclose(out_big, ref_big, atol=1e-5, rtol=1e-5)

    print("KERNEL_OK")
</pallas_src>

<mosaic_0001>
module attributes {stable_mosaic.version = 11 : i64} {
  func.func @_net_kernel(%arg0: i32, %arg1: memref<11xf32, #tpu.memory_space<smem>>, %arg2: memref<6x8x128xf32, #tpu.memory_space<vmem>>, %arg3: memref<8x128xf32, #tpu.memory_space<vmem>>) attributes {dimension_semantics = [#tpu.dimension_semantics<parallel>], iteration_bounds = array<i64: 1>, scalar_prefetch = 0 : i64, scratch_operands = 0 : i64, tpu.core_type = #tpu.core_type<tc>, window_params = [{transform_indices = @transform_0, window_bounds = array<i64: 11>}, {transform_indices = @transform_1, window_bounds = array<i64: 6, 8, 128>}, {transform_indices = @transform_2, window_bounds = array<i64: 8, 128>}]} {
    %c0 = arith.constant 0 : index
    %c0_0 = arith.constant 0 : index
    %c0_1 = arith.constant 0 : index
    %0 = vector.load %arg2[%c0, %c0_0, %c0_1] : memref<6x8x128xf32, #tpu.memory_space<vmem>>, vector<1x8x128xf32>
    %1 = vector.shape_cast %0 : vector<1x8x128xf32> to vector<8x128xf32>
    %c1 = arith.constant 1 : index
    %c0_2 = arith.constant 0 : index
    %c0_3 = arith.constant 0 : index
    %2 = vector.load %arg2[%c1, %c0_2, %c0_3] : memref<6x8x128xf32, #tpu.memory_space<vmem>>, vector<1x8x128xf32>
    %3 = vector.shape_cast %2 : vector<1x8x128xf32> to vector<8x128xf32>
    %c2 = arith.constant 2 : index
    %c0_4 = arith.constant 0 : index
    %c0_5 = arith.constant 0 : index
    %4 = vector.load %arg2[%c2, %c0_4, %c0_5] : memref<6x8x128xf32, #tpu.memory_space<vmem>>, vector<1x8x128xf32>
    %5 = vector.shape_cast %4 : vector<1x8x128xf32> to vector<8x128xf32>
    %c3 = arith.constant 3 : index
    %c0_6 = arith.constant 0 : index
    %c0_7 = arith.constant 0 : index
    %6 = vector.load %arg2[%c3, %c0_6, %c0_7] : memref<6x8x128xf32, #tpu.memory_space<vmem>>, vector<1x8x128xf32>
    %7 = vector.shape_cast %6 : vector<1x8x128xf32> to vector<8x128xf32>
    %c4 = arith.constant 4 : index
    %c0_8 = arith.constant 0 : index
    %c0_9 = arith.constant 0 : index
    %8 = vector.load %arg2[%c4, %c0_8, %c0_9] : memref<6x8x128xf32, #tpu.memory_space<vmem>>, vector<1x8x128xf32>
    %9 = vector.shape_cast %8 : vector<1x8x128xf32> to vector<8x128xf32>
    %c5 = arith.constant 5 : index
    %c0_10 = arith.constant 0 : index
    %c0_11 = arith.constant 0 : index
    %10 = vector.load %arg2[%c5, %c0_10, %c0_11] : memref<6x8x128xf32, #tpu.memory_space<vmem>>, vector<1x8x128xf32>
    %11 = vector.shape_cast %10 : vector<1x8x128xf32> to vector<8x128xf32>
    %c0_12 = arith.constant 0 : index
    %12 = memref.load %arg1[%c0_12] : memref<11xf32, #tpu.memory_space<smem>>
    %13 = vector.broadcast %12 : f32 to vector<8x128xf32>
    %14 = arith.mulf %13, %1 : vector<8x128xf32>
    %c1_13 = arith.constant 1 : index
    %15 = memref.load %arg1[%c1_13] : memref<11xf32, #tpu.memory_space<smem>>
    %16 = vector.broadcast %15 : f32 to vector<8x128xf32>
    %17 = arith.mulf %16, %3 : vector<8x128xf32>
    %18 = arith.addf %14, %17 : vector<8x128xf32>
    %c2_14 = arith.constant 2 : index
    %19 = memref.load %arg1[%c2_14] : memref<11xf32, #tpu.memory_space<smem>>
    %20 = vector.broadcast %19 : f32 to vector<8x128xf32>
    %21 = arith.mulf %20, %5 : vector<8x128xf32>
    %22 = arith.addf %18, %21 : vector<8x128xf32>
    %c3_15 = arith.constant 3 : index
    %23 = memref.load %arg1[%c3_15] : memref<11xf32, #tpu.memory_space<smem>>
    %24 = vector.broadcast %23 : f32 to vector<8x128xf32>
    %25 = arith.addf %22, %24 : vector<8x128xf32>
    %cst = arith.constant 0.000000e+00 : f32
    %26 = vector.broadcast %cst : f32 to vector<8x128xf32>
    %27 = arith.maximumf %25, %26 : vector<8x128xf32>
    %c4_16 = arith.constant 4 : index
    %28 = memref.load %arg1[%c4_16] : memref<11xf32, #tpu.memory_space<smem>>
    %29 = vector.broadcast %28 : f32 to vector<8x128xf32>
    %30 = arith.mulf %29, %7 : vector<8x128xf32>
    %c5_17 = arith.constant 5 : index
    %31 = memref.load %arg1[%c5_17] : memref<11xf32, #tpu.memory_space<smem>>
    %32 = vector.broadcast %31 : f32 to vector<8x128xf32>
    %33 = arith.mulf %32, %9 : vector<8x128xf32>
    %34 = arith.addf %30, %33 : vector<8x128xf32>
    %c6 = arith.constant 6 : index
    %35 = memref.load %arg1[%c6] : memref<11xf32, #tpu.memory_space<smem>>
    %36 = vector.broadcast %35 : f32 to vector<8x128xf32>
    %37 = arith.mulf %36, %11 : vector<8x128xf32>
    %38 = arith.addf %34, %37 : vector<8x128xf32>
    %c7 = arith.constant 7 : index
    %39 = memref.load %arg1[%c7] : memref<11xf32, #tpu.memory_space<smem>>
    %40 = vector.broadcast %39 : f32 to vector<8x128xf32>
    %41 = arith.addf %38, %40 : vector<8x128xf32>
    %cst_18 = arith.constant 0.000000e+00 : f32
    %42 = vector.broadcast %cst_18 : f32 to vector<8x128xf32>
    %43 = arith.maximumf %41, %42 : vector<8x128xf32>
    %c8 = arith.constant 8 : index
    %44 = memref.load %arg1[%c8] : memref<11xf32, #tpu.memory_space<smem>>
    %45 = vector.broadcast %44 : f32 to vector<8x128xf32>
    %46 = arith.mulf %45, %27 : vector<8x128xf32>
    %c9 = arith.constant 9 : index
    %47 = memref.load %arg1[%c9] : memref<11xf32, #tpu.memory_space<smem>>
    %48 = vector.broadcast %47 : f32 to vector<8x128xf32>
    %49 = arith.mulf %48, %43 : vector<8x128xf32>
    %50 = arith.addf %46, %49 : vector<8x128xf32>
    %c10 = arith.constant 10 : index
    %51 = memref.load %arg1[%c10] : memref<11xf32, #tpu.memory_space<smem>>
    %52 = vector.broadcast %51 : f32 to vector<8x128xf32>
    %53 = arith.addf %50, %52 : vector<8x128xf32>
    %54 = arith.negf %53 : vector<8x128xf32>
    %55 = math.exp %54 : vector<8x128xf32>
    %cst_19 = arith.constant 1.000000e+00 : f32
    %56 = vector.broadcast %cst_19 : f32 to vector<8x128xf32>
    %57 = arith.addf %56, %55 : vector<8x128xf32>
    %58 = arith.divf %56, %57 : vector<8x128xf32>
    %c0_20 = arith.constant 0 : index
    %c0_21 = arith.constant 0 : index
    %59 = vector.load %arg3[%c0_20, %c0_21] : memref<8x128xf32, #tpu.memory_space<vmem>>, vector<8x128xf32>
    tpu.vector_store %arg3[%c0_20, %c0_21], %58 {strides = array<i32>} : memref<8x128xf32, #tpu.memory_space<vmem>>, vector<8x128xf32>,
    return
  }
  func.func @transform_0(%arg0: i32) -> i32 {
    %c0_i32 = arith.constant 0 : i32
    %c0_i32_0 = arith.constant 0 : i32
    return %c0_i32 : i32
  }
  func.func @transform_1(%arg0: i32) -> (i32, i32, i32) {
    %c0_i32 = arith.constant 0 : i32
    %c0_i32_0 = arith.constant 0 : i32
    %c0_i32_1 = arith.constant 0 : i32
    return %c0_i32, %arg0, %c0_i32_0 : i32, i32, i32
  }
  func.func @transform_2(%arg0: i32) -> (i32, i32) {
    %c0_i32 = arith.constant 0 : i32
    %c0_i32_0 = arith.constant 0 : i32
    return %arg0, %c0_i32 : i32, i32
  }
}

</mosaic_0001>

<bundles_post_ra>
// kernel: net_forward.1
= control target key start
LH: loop header
LB: loop body
LE: loop exit
PB: predicated region body
PF: predicated region fallthrough
CT: control target
= control target key end

     0   :  { %7 = vsyncpa [#allocation3], 0  ;;  %s162_s0 = inlined_call_operand.vmem [shape: f32[11], index: 0, kind: input, shape index: {}]   ;;  %s163_s1 = inlined_call_operand.vmem [shape: f32[6,8,128], index: 1, kind: input, shape index: {}]   ;;  %s164_s2 = inlined_call_operand.vmem [shape: f32[8,128], index: 2, kind: output, shape index: {}]  }
   0x1   :  { %s14_s11 = sshll.u32 %s162_s0, 4  ;;  %s15_s11 = int_to_ptr.vmem [resolvable:$true] %s14_s11 }
   0x2   :  { %s108_s12 = scalar_lea.vmem %s15_s11, 16  ;;  %p113_p1 = scmp.lt.s32.totalorder %s15_s11, %s15_s11 }
   0x3   :  { %p109_p0 = scmp.ne.s32.totalorder %s15_s11, %s108_s12  ;;  %p114_p2 = scmp.lt.s32.totalorder %s108_s12, %s108_s12 }
   0x5   :  { %p115_p3 = por %p114_p2, %p113_p1 }
   0x7   :  { %p116_p4 = pnand %p115_p3, %p109_p0 }
   0x9   :  { %119 = shalt.err (!%p116_p4)
}
   0xa   :  { %s122_s13 = smov [#allocation2]  }
   0xb   :  { %17 = dma.vmem_to_smem %s15_s11, 16, %s122_s13, [#allocation3]  }
   0xc   :  { %120 = dma.done.wait [#allocation3], 16  }
   0xd   :  { %121 = vsyncadd [#allocation3], 4294967280 }
   0xe   :  { %23 = sfence }
   0xf   :  { %s35_s14 = sld [smem:[#allocation2]]  ;;  %v24_v0 = vld [vmem:[%s163_s1] sm:$0xff]  ;;  %v87_v1 = vld [vmem:[%s163_s1 + $0x8] sm:$0xff]  ;;  %v88_v2 = vld [vmem:[%s163_s1 + $0x10] sm:$0xff] }
  0x10   :  { %s92_s15 = sld [smem:[#allocation2 + $0x1]]  ;;  %v89_v6 = vld [vmem:[%s163_s1 + $0x18] sm:$0xff]  ;;  %v90_v9 = vld [vmem:[%s163_s1 + $0x20] sm:$0xff]  ;;  %v91_v11 = vld [vmem:[%s163_s1 + $0x28] sm:$0xff] }
  0x11   :  { %s93_s16 = sld [smem:[#allocation2 + $0x2]] }
  0x12   :  { %s94_s17 = sld [smem:[#allocation2 + $0x3]] }
  0x13   :  { %s95_s0 = sld [smem:[#allocation2 + $0x4]] }
  0x14   :  { %s96_s22 = sld [smem:[#allocation2 + $0x5]] }
  0x15   :  { %v36_v3 = vstv %s35_s14  ;;  %s97_s25 = sld [smem:[#allocation2 + $0x6]] }
  0x16   :  { %v37_v4 = vmul.f32 %v36_v3, %v24_v0  ;;  %v39_v5 = vstv %s92_s15  ;;  %s98_s26 = sld [smem:[#allocation2 + $0x7]] }
  0x17   :  { %v40_v7 = vmul.f32 %v87_v1, %v39_v5  ;;  %v43_v8 = vstv %s93_s16  ;;  %s99_s3 = sld [smem:[#allocation2 + $0x8]] }
  0x18   :  { %v44_v10 = vmul.f32 %v88_v2, %v43_v8  ;;  %v47_v14 = vstv %s94_s17  ;;  %s100_s6 = sld [smem:[#allocation2 + $0x9]] }
  0x19   :  { %v41_v12 = vadd.f32 %v40_v7, %v37_v4  ;;  %v51_v13 = vstv %s95_s0  ;;  %s101_s7 = sld [smem:[#allocation2 + $0xa]] }
  0x1a   :  { %v52_v15 = vmul.f32 %v89_v6, %v51_v13  ;;  %v54_v16 = vstv %s96_s22 }
  0x1b   :  { %v45_v17 = vadd.f32 %v44_v10, %v41_v12  ;;  %v55_v18 = vmul.f32 %v90_v9, %v54_v16  ;;  %v58_v19 = vstv %s97_s25 }
  0x1c   :  { %v59_v20 = vmul.f32 %v91_v11, %v58_v19  ;;  %v62_v23 = vstv %s98_s26 }
  0x1d   :  { %v48_v21 = vadd.f32 %v47_v14, %v45_v17  ;;  %v56_v22 = vadd.f32 %v55_v18, %v52_v15  ;;  %v66_v26 = vstv %s99_s3 }
  0x1e   :  { %v69_v28 = vstv %s100_s6 }
  0x1f   :  { %v49_v24 = vmax.f32 %v48_v21, 0.0  ;;  %v60_v25 = vadd.f32 %v59_v20, %v56_v22  ;;  %v73_v32 = vstv %s101_s7 }
  0x21   :  { %v63_v27 = vadd.f32 %v62_v23, %v60_v25  ;;  %v67_v30 = vmul.f32 %v66_v26, %v49_v24 }
  0x23   :  { %v64_v29 = vmax.f32 %v63_v27, 0.0 }
  0x25   :  { %v70_v31 = vmul.f32 %v69_v28, %v64_v29 }
  0x27   :  { %v71_v33 = vadd.f32 %v70_v31, %v67_v30 }
  0x29   :  { %v74_v34 = vadd.f32 %v73_v32, %v71_v33 }
  0x2b   :  { %v102_v35 = vmul.f32 -1.442695, %v74_v34 }
  0x2d   :  { %104 = vpow2.f32 %v102_v35 }
  0x3a   :  { %v105_v36 = vpop.eup %104 }
  0x3b   :  { %v78_v37 = vadd.f32 1.0, %v105_v36 }
  0x3d   :  { %106 = vrcp.f32 %v78_v37 }
  0x4a   :  { %v107_v38 = vpop.eup %106 }
  0x4b   :  { %81 = vst [vmem:[%s164_s2] sm:$0xff] %v107_v38 }
  0x4c   :  { %86 = vsyncpa [#allocation3], 1 }

</bundles_post_ra>
